<compile_context>
chip_gen: v7x
topology: tpu7x:2x2x1
jax: 0.10.0
libtpu: 0.0.40
codegen_flags: <defaults>
</compile_context>

<pallas_src>
import functools

import jax
import jax.numpy as jnp
from jax.experimental import pallas as pl
from jax.experimental.pallas import tpu as pltpu


def _round_up(x: int, m: int) -> int:
    return (x + m - 1) // m * m


def _largest_div(n: int, candidates) -> int:
    for c in candidates:
        if n % c == 0:
            return c
    return candidates[-1]


def _vmem_budget() -> int:
    """Per-generation VMEM budget (bytes) for kernel blocks."""
    try:
        cap = int(getattr(pltpu.get_tpu_info(), "vmem_capacity_bytes", 64 << 20))
    except Exception:
        cap = 64 << 20  # conservative default: v7x has 64 MiB per TensorCore
    # ~45% of physical VMEM; never above 48 MiB (plenty on v5e/v6e's 128 MiB,
    # ~28.8 MiB on v7x).
    return min(int(cap * 0.45), 48 << 20)


# ----------------------------------------------------------------------------
# Kernels
# ----------------------------------------------------------------------------
def _matmul_kernel_single_k(relu: bool):
    """Single k-step: no accumulator scratch, dot + epilogue written directly."""

    def kernel(x_ref, w_ref, o_ref):
        # x block is f32 (read straight from HBM); cast to bf16 at the MXU.
        y = jnp.dot(x_ref[...].astype(jnp.bfloat16), w_ref[...],
                    preferred_element_type=jnp.float32)
        if relu:
            y = jnp.maximum(y, 0.0)
        o_ref[...] = y.astype(o_ref.dtype)

    return kernel


def _matmul_kernel_multi_k(relu: bool):
    """k-tiled reduction with f32 VMEM accumulator (k is the innermost axis)."""

    def kernel(x_ref, w_ref, o_ref, acc_ref):
        k = pl.program_id(2)

        @pl.when(k == 0)
        def _():
            acc_ref[...] = jnp.zeros_like(acc_ref)

        acc_ref[...] += jnp.dot(x_ref[...].astype(jnp.bfloat16), w_ref[...],
                                preferred_element_type=jnp.float32)

        @pl.when(k == pl.num_programs(2) - 1)
        def _():
            y = acc_ref[...]
            if relu:
                y = jnp.maximum(y, 0.0)
            o_ref[...] = y.astype(o_ref.dtype)

    return kernel


def _bn_epilogue_kernel(relu: bool):
    """Elementwise y * scale + shift (+ReLU), tiled over rows and columns."""

    def kernel(y_ref, scale_ref, shift_ref, o_ref):
        y = y_ref[...] * scale_ref[...] + shift_ref[...]
        if relu:
            y = jnp.maximum(y, 0.0)
        o_ref[...] = y.astype(o_ref.dtype)

    return kernel


# ----------------------------------------------------------------------------
# Parameter preparation (one-time, host side)
# ----------------------------------------------------------------------------
def prepare_params(weight, gamma=None, beta=None):
    """One-time parameter prep:
      * reshape the (C_out, C_in, 1, 1) Conv2d weight to 2D,
      * transpose to (C_in, C_out) so the kernel does a plain row-major
        contraction (no in-kernel transpose),
      * pad channel dims to lane/MXU-friendly multiples,
      * cast to bf16 (halves per-step weight HBM traffic),
      * pad/reshape BN gamma/beta to (1, C_out_p) f32.
    """
    C_out, C_in = int(weight.shape[0]), int(weight.shape[1])
    budget = _vmem_budget()

    C_in_p, C_out_p = _round_up(C_in, 128), _round_up(C_out, 128)
    resident = 2 * (C_in_p * C_out_p * 2) <= budget // 2
    if not resident:
        # Tiled path: pad to 256 multiples so tn/tk never fall back to 128
        # (full passes on v6e/v7x's 256x256 MXU).
        C_in_p, C_out_p = _round_up(C_in, 256), _round_up(C_out, 256)

    w2d = weight.reshape(C_out, C_in).astype(jnp.float32).T  # (C_in, C_out)
    w_pad = jnp.pad(w2d, ((0, C_in_p - C_in), (0, C_out_p - C_out)))
    w_pad = w_pad.astype(jnp.bfloat16)

    gamma_pad = beta_pad = None
    if gamma is not None:
        gamma_pad = jnp.pad(gamma.astype(jnp.float32),
                            (0, C_out_p - C_out)).reshape(1, C_out_p)
    if beta is not None:
        beta_pad = jnp.pad(beta.astype(jnp.float32),
                           (0, C_out_p - C_out)).reshape(1, C_out_p)
    return w_pad, gamma_pad, beta_pad


# ----------------------------------------------------------------------------
# Forward pass
# ----------------------------------------------------------------------------
def conv_forward(x, w_pad, gamma_pad=None, beta_pad=None, *, c_out,
                 relu: bool = False, bn: bool = False):
    """Forward pass of the `conv` module.

    x:        (N, C_in, 1, 1) float32 NCHW (spatial must be 1x1)
    w_pad:    (C_in_p, C_out_p) bf16 pre-transposed/padded weight
              (from prepare_params).
    gamma_pad, beta_pad: (1, C_out_p) f32 BN affine params (only if bn).
    c_out:    true number of output channels (static python int).
    returns:  (N, c_out) in x.dtype.
    """
    N, C_in, H, W = x.shape
    assert H == 1 and W == 1, "forward squeezes dims 2 and 3 -> spatial must be 1x1"
    C_in_p, C_out_p = int(w_pad.shape[0]), int(w_pad.shape[1])
    assert C_in <= C_in_p and c_out <= C_out_p
    out_dtype = x.dtype
    budget = _vmem_budget()

    # ---- tile selection ----------------------------------------------------
    resident = 2 * (C_in_p * C_out_p * 2) <= budget // 2
    if resident:
        # Weight fits VMEM: one full-array block -> DMA'd from HBM exactly once.
        tk, tn = C_in_p, C_out_p
    else:
        tn = _largest_div(C_out_p, (512, 256, 128))
        tk = _largest_div(C_in_p, (1024, 512, 256, 128))
    gk = C_in_p // tk

    tm = min(512, _round_up(N, 8))

    def _need(tm_):
        n = 2 * tm_ * tk * 4        # f32 activation blocks (double-buffered)
        n += 2 * tk * tn * 2        # bf16 weight blocks (double-buffered)
        n += 2 * tm_ * tn * 4       # output blocks (double-buffered, f32-sized)
        if gk > 1:
            n += tm_ * tn * 4       # f32 accumulator scratch
        return n

    while _need(tm) > budget and tm > 8:
        tm = max(8, _round_up(tm // 2, 8))
    Np = _round_up(N, tm)
    gm, gn = Np // tm, C_out_p // tn
    vmem_limit = budget if _need(tm) <= budget else int(_need(tm) * 1.25)

    # ---- activations: pad only when needed; keep f32 (cast in-kernel) ------
    x2d = x.reshape(N, C_in)
    if Np != N or C_in_p != C_in:
        x2d = jnp.pad(x2d, ((0, Np - N), (0, C_in_p - C_in)))

    # ---- matmul ------------------------------------------------------------
    mm_relu = relu and not bn                      # BN applies ReLU afterwards
    mm_dtype = jnp.float32 if bn else out_dtype    # f32 intermediate for stats

    if gk == 1:
        y = pl.pallas_call(
            _matmul_kernel_single_k(mm_relu),
            out_shape=jax.ShapeDtypeStruct((Np, C_out_p), mm_dtype),
            grid=(gm, gn),
            in_specs=[pl.BlockSpec((tm, tk), lambda i, j: (i, 0)),
                      pl.BlockSpec((tk, tn), lambda i, j: (0, j))],
            out_specs=pl.BlockSpec((tm, tn), lambda i, j: (i, j)),
            compiler_params=pltpu.CompilerParams(
                dimension_semantics=("parallel", "parallel"),
                vmem_limit_bytes=int(vmem_limit)),
        )(x2d, w_pad)
    else:
        y = pl.pallas_call(
            _matmul_kernel_multi_k(mm_relu),
            out_shape=jax.ShapeDtypeStruct((Np, C_out_p), mm_dtype),
            grid=(gm, gn, gk),
            in_specs=[pl.BlockSpec((tm, tk), lambda i, j, k: (i, k)),
                      pl.BlockSpec((tk, tn), lambda i, j, k: (k, j))],
            out_specs=pl.BlockSpec((tm, tn), lambda i, j, k: (i, j)),
            scratch_shapes=[pltpu.VMEM((tm, tn), jnp.float32)],
            compiler_params=pltpu.CompilerParams(
                dimension_semantics=("parallel", "parallel", "arbitrary"),
                vmem_limit_bytes=int(vmem_limit)),
        )(x2d, w_pad)

    # ---- BatchNorm2d (training-mode batch stats) + ReLU epilogue -----------
    if bn:
        assert gamma_pad is not None and beta_pad is not None
        # Zero-padded batch rows contribute 0 to both sums, so dividing by the
        # true batch size keeps the statistics exact.
        inv_n = 1.0 / float(N)
        s1 = jnp.sum(y, axis=0, keepdims=True)
        s2 = jnp.sum(y * y, axis=0, keepdims=True)
        mean = s1 * inv_n
        var = jnp.maximum(s2 * inv_n - mean * mean, 0.0)
        scale = gamma_pad * jax.lax.rsqrt(var + 1e-5)      # (1, C_out_p)
        shift = beta_pad - mean * scale                    # (1, C_out_p)

        tnn = _largest_div(C_out_p, (512, 256, 128))
        y = pl.pallas_call(
            _bn_epilogue_kernel(relu),
            out_shape=jax.ShapeDtypeStruct((Np, C_out_p), out_dtype),
            grid=(gm, C_out_p // tnn),
            in_specs=[pl.BlockSpec((tm, tnn), lambda i, j: (i, j)),
                      pl.BlockSpec((1, tnn), lambda i, j: (0, j)),
                      pl.BlockSpec((1, tnn), lambda i, j: (0, j))],
            out_specs=pl.BlockSpec((tm, tnn), lambda i, j: (i, j)),
            compiler_params=pltpu.CompilerParams(
                dimension_semantics=("parallel", "parallel")),
        )(y, scale, shift)

    # ---- drop padding only when there is some -------------------------------
    if Np != N or C_out_p != c_out:
        y = y[:N, :c_out]
    return y


def init_params(key, input_dim, output_dim):
    """kaiming_normal_ (mode='fan_out', relu) init for the 1x1 conv weight,
    plus BatchNorm affine params (gamma=1, beta=0) per weights_init_kaiming."""
    fan_out = output_dim  # C_out * kH * kW with kH = kW = 1
    std = jnp.sqrt(2.0) / jnp.sqrt(fan_out)
    weight = std * jax.random.normal(
        key, (output_dim, input_dim, 1, 1), dtype=jnp.float32)
    gamma = jnp.ones((output_dim,), dtype=jnp.float32)
    beta = jnp.zeros((output_dim,), dtype=jnp.float32)
    return weight, gamma, beta


if __name__ == "__main__":
    key = jax.random.PRNGKey(0)
    k_x, k_w = jax.random.split(key)

    N, C_in, C_out = 2, 4, 8
    x = jax.random.normal(k_x, (N, C_in, 1, 1), dtype=jnp.float32)
    weight, gamma, beta = init_params(k_w, C_in, C_out)
    w_pad, gamma_pad, beta_pad = prepare_params(weight, gamma, beta)

    x2d = x.reshape(N, C_in)
    w2d = weight.reshape(C_out, C_in)

    # Path 1: module defaults (relu=False, BN=False) -> pure 1x1 conv + squeeze.
    fwd = jax.jit(functools.partial(conv_forward, c_out=C_out,
                                    relu=False, bn=False))
    out = fwd(x, w_pad)
    jax.block_until_ready(out)
    ref = x2d @ w2d.T
    assert out.shape == (N, C_out)
    assert jnp.allclose(out, ref, atol=2e-2, rtol=2e-2), "conv path mismatch"

    # Path 2: BN + ReLU (training-mode batch statistics like nn.BatchNorm2d).
    # TODO(synk): running_mean/running_var tracking (a training side effect of
    # nn.BatchNorm2d) is not modelled; only the forward output is computed.
    fwd_bn = jax.jit(functools.partial(conv_forward, c_out=C_out,
                                       relu=True, bn=True))
    out_bn = fwd_bn(x, w_pad, gamma_pad, beta_pad)
    jax.block_until_ready(out_bn)
    y = x2d @ w2d.T
    mean = y.mean(0, keepdims=True)
    var = ((y - mean) ** 2).mean(0, keepdims=True)
    ref_bn = jnp.maximum((y - mean) / jnp.sqrt(var + 1e-5) * gamma + beta, 0.0)
    assert out_bn.shape == (N, C_out)
    assert jnp.allclose(out_bn, ref_bn, atol=2e-2, rtol=2e-2), "bn path mismatch"

    print("KERNEL_OK")
</pallas_src>

<mosaic_0001>
module attributes {stable_mosaic.version = 11 : i64} {
  func.func @kernel(%arg0: i32, %arg1: i32, %arg2: memref<8x128xf32, #tpu.memory_space<vmem>>, %arg3: memref<128x128xbf16, #tpu.memory_space<vmem>>, %arg4: memref<8x128xf32, #tpu.memory_space<vmem>>) attributes {dimension_semantics = [#tpu.dimension_semantics<parallel>, #tpu.dimension_semantics<parallel>], iteration_bounds = array<i64: 1, 1>, scalar_prefetch = 0 : i64, scratch_operands = 0 : i64, tpu.core_type = #tpu.core_type<tc>, window_params = [{transform_indices = @transform_0, window_bounds = array<i64: 8, 128>}, {transform_indices = @transform_1, window_bounds = array<i64: 128, 128>}, {transform_indices = @transform_2, window_bounds = array<i64: 8, 128>}]} {
    %c0 = arith.constant 0 : index
    %c0_0 = arith.constant 0 : index
    %0 = vector.load %arg2[%c0, %c0_0] : memref<8x128xf32, #tpu.memory_space<vmem>>, vector<8x128xf32>
    %1 = arith.truncf %0 : vector<8x128xf32> to vector<8x128xbf16>
    %c0_1 = arith.constant 0 : index
    %c0_2 = arith.constant 0 : index
    %2 = vector.load %arg3[%c0_1, %c0_2] : memref<128x128xbf16, #tpu.memory_space<vmem>>, vector<128x128xbf16>
    %cst = arith.constant dense<0.000000e+00> : vector<8x128xf32>
    %3 = tpu.matmul %1, %2, %cst {dimension_numbers = #tpu.dot_dimension_numbers<[1], [0], [0], [1], [0, 0, 1, 1], [], []>} : vector<8x128xbf16>, vector<128x128xbf16>, vector<8x128xf32> -> vector<8x128xf32>
    %c0_3 = arith.constant 0 : index
    %c0_4 = arith.constant 0 : index
    %4 = vector.load %arg4[%c0_3, %c0_4] : memref<8x128xf32, #tpu.memory_space<vmem>>, vector<8x128xf32>
    tpu.vector_store %arg4[%c0_3, %c0_4], %3 {strides = array<i32>} : memref<8x128xf32, #tpu.memory_space<vmem>>, vector<8x128xf32>,
    return
  }
  func.func @transform_0(%arg0: i32, %arg1: i32) -> (i32, i32) {
    %c0_i32 = arith.constant 0 : i32
    %c0_i32_0 = arith.constant 0 : i32
    return %arg0, %c0_i32 : i32, i32
  }
  func.func @transform_1(%arg0: i32, %arg1: i32) -> (i32, i32) {
    %c0_i32 = arith.constant 0 : i32
    %c0_i32_0 = arith.constant 0 : i32
    return %c0_i32, %arg1 : i32, i32
  }
  func.func @transform_2(%arg0: i32, %arg1: i32) -> (i32, i32) {
    %c0_i32 = arith.constant 0 : i32
    return %arg0, %arg1 : i32, i32
  }
}

</mosaic_0001>

<bundles_post_ra>
// kernel: conv_forward.1
= control target key start
LH: loop header
LB: loop body
LE: loop exit
PB: predicated region body
PF: predicated region fallthrough
CT: control target
= control target key end

     0   :  { %7 = vsyncpa [#allocation3], 0  ;;  %s212_s9 = smov [#allocation2]   ;;  %s250_s0 = inlined_call_operand.vmem [shape: f32[8,128], index: 0, kind: input, shape index: {}]   ;;  %s251_s1 = inlined_call_operand.hbm [shape: bf16[128,128], index: 1, kind: input, shape index: {}]   ;;  %s252_s2 = inlined_call_operand.vmem [shape: f32[8,128], index: 2, kind: output, shape index: {}]  }
   0x1   :  { %s15_s10 = sshll.u32 %s212_s9, 4  ;;  %s188_s13 = scalar_lea.hbm %s251_s1, 1024  ;;  %s16_s10 = int_to_ptr.vmem [resolvable:$true] %s15_s10 }
   0x2   :  { %p189_p0 = scmp.ne.s32.totalorder %s251_s1, %s188_s13  ;;  %p192_p1 = scmp.lt.u32.totalorder %s188_s13, %s251_s1 }
   0x4   :  { %p194_p2 = pnand %p192_p1, %p189_p0 }
   0x6   :  { %197 = shalt.err (!%p194_p2)
}
   0x7   :  { %s198_s18 = scalar_lea.vmem %s16_s10, 1024  ;;  %p203_p4 = scmp.lt.s32.totalorder %s16_s10, %s16_s10 }
   0x8   :  { %p199_p3 = scmp.ne.s32.totalorder %s16_s10, %s198_s18  ;;  %p204_p5 = scmp.lt.s32.totalorder %s198_s18, %s198_s18 }
   0xa   :  { %p205_p6 = por %p204_p5, %p203_p4 }
   0xc   :  { %p206_p7 = pnand %p205_p6, %p199_p3 }
   0xe   :  { %209 = shalt.err (!%p206_p7)
}
   0xf   :  { %s213_s19 = smov 64   ;;  %s214_s20 = smov 4  }
  0x10   :  { %21 = dma.hbm_to_vmem [thread:$0]  %s251_s1, 1024, %s16_s10, [#allocation3], %s213_s19, %s213_s19, %s214_s20  }
  0x11   :  { %210 = dma.done.wait [#allocation3], 1024  }
  0x12   :  { %211 = vsyncadd [#allocation3], 4294966272  ;;  %v215_v0 = vmov 0.0   ;;  %vm216_vm0 = vmmov 0   ;;  %v180_v1 = vld [vmem:[#allocation2] sm:$0xff]   ;;  %v181_v2 = vld [vmem:[#allocation2 + $0x8] sm:$0xff]  }
  0x13   :  { %155 = vmatprep.subr.bf16.mxu0 %v215_v0  ;;  %171 = vmatprep.mubr.msk.bf16.mxu0 %vm216_vm0, %v215_v0  ;;  %v182_v3 = vld [vmem:[#allocation2 + $0x10] sm:$0xff]   ;;  %v183_v4 = vld [vmem:[#allocation2 + $0x18] sm:$0xff]   ;;  %v184_v5 = vld [vmem:[#allocation2 + $0x20] sm:$0xff]  }
  0x14   :  { %156 = vmatpush3.bf16.msra.mxu0 %v180_v1  ;;  %v185_v6 = vld [vmem:[#allocation2 + $0x28] sm:$0xff]   ;;  %v186_v7 = vld [vmem:[#allocation2 + $0x30] sm:$0xff]   ;;  %v187_v8 = vld [vmem:[#allocation2 + $0x38] sm:$0xff]  }
  0x15   :  { %157 = vmatprep.subr.bf16.mxu0 %v215_v0  ;;  %v26_v9 = vld [vmem:[%s250_s0] sm:$0xff] }
  0x16   :  { %v27_v10 = vpack.c.bf16 %v26_v9, %v26_v9 }
  0x18   :  { %158 = vmatpush3.bf16.msra.mxu0 %v181_v2 }
  0x19   :  { %159 = vmatprep.subr.bf16.mxu0 %v215_v0 }
  0x1c   :  { %160 = vmatpush3.bf16.msra.mxu0 %v182_v3 }
  0x1d   :  { %161 = vmatprep.subr.bf16.mxu0 %v215_v0 }
  0x20   :  { %162 = vmatpush3.bf16.msra.mxu0 %v183_v4 }
  0x21   :  { %163 = vmatprep.subr.bf16.mxu0 %v215_v0 }
  0x24   :  { %164 = vmatpush3.bf16.msra.mxu0 %v184_v5 }
  0x25   :  { %165 = vmatprep.subr.bf16.mxu0 %v215_v0 }
  0x28   :  { %166 = vmatpush3.bf16.msra.mxu0 %v185_v6 }
  0x29   :  { %167 = vmatprep.subr.bf16.mxu0 %v215_v0 }
  0x2c   :  { %168 = vmatpush3.bf16.msra.mxu0 %v186_v7 }
  0x2d   :  { %169 = vmatprep.subr.bf16.mxu0 %v215_v0 }
  0x30   :  { %170 = vmatpush3.bf16.msra.mxu0 %v187_v8 }
  0x33   :  { %172 = vmatmul.mubr.bf16.vlgmr.msra.gmra.mrb[0].mxu0 %v27_v10 }
 0x106   :  { %v126_v11 = vpop.f32.mrb[0].mxu0 }
 0x107   :  { %132 = vst [vmem:[%s252_s2] sm:$0xff] %v126_v11  ;;  %v173_v12 = vpop.f32.mrb[1].mxu0 }
 0x108   :  { %v129_v13 = vpop.f32.mrb[2].mxu0 }
 0x109   :  { %v174_v14 = vpop.f32.mrb[3].mxu0 }
 0x10a   :  { %137 = vsyncpa [#allocation3], 1 }

</bundles_post_ra>
